<compile_context>
chip_gen: v5e
topology: v5e:2x2
jax: 0.10.0
libtpu: 0.0.40
codegen_flags: <defaults>
</compile_context>

<pallas_src>
import jax
import jax.numpy as jnp
from jax import lax
from jax.experimental import pallas as pl
from jax.experimental.pallas import tpu as pltpu


# --------------------------------------------------------------------------
# Generation-aware sizing helpers
# --------------------------------------------------------------------------
def _round_up(a, b):
    return -(-a // b) * b


def _vmem_capacity_bytes():
    """Physical VMEM per TensorCore; conservative 64 MiB (v7x) if unknown."""
    try:
        info = pltpu.get_tpu_info()
        cap = int(getattr(info, "vmem_capacity_bytes", 0) or 0)
        if cap > 0:
            return cap
    except Exception:
        pass
    return 64 * 1024 * 1024


def _choose_tiling(hw, c, x_itemsize, cc_blocks, block_k=None):
    """Return (padded_HW, TK).

    TK is the largest multiple of 128 whose per-step working set
    (double-buffered x tile + mask tile + resident (C,C) blocks + headroom)
    fits ~75% of VMEM, capped at 8192 (128 MiB chips) / 4096 (64 MiB chips).
    HW is zero-padded up to a multiple of TK (or 128) -- never a full-HW tile.
    """
    if block_k is not None:
        tk = int(block_k)
        assert tk % 128 == 0, "block_k must be a multiple of 128"
        return _round_up(hw, tk), tk

    cap = _vmem_capacity_bytes()
    budget = int(cap * 0.75)
    tk_cap = 8192 if cap > (96 << 20) else 4096       # tighter on 64 MiB VMEM
    fixed = 2 * cc_blocks * c * c * 4 + (2 << 20)     # resident (C,C) bufs + headroom
    per_col = 2 * c * x_itemsize + 2 * 4              # dbl-buffered x col + mask col
    max_tk = min(tk_cap, max(128, (budget - fixed) // per_col))
    max_tk = max(128, max_tk - max_tk % 128)

    hw128 = _round_up(hw, 128)
    if hw128 <= max_tk:
        return hw128, hw128
    # prefer a large multiple-of-128 divisor of the minimally padded HW
    t = max_tk
    while t >= 1024:
        if hw128 % t == 0:
            return hw128, t
        t -= 128
    # otherwise pad HW up to a multiple of max_tk (at most one extra tile)
    return _round_up(hw, max_tk), max_tk


def _vmem_limit_bytes(c, tk, x_itemsize, cc_blocks):
    """Shape-derived scoped-VMEM limit (working set + headroom, <= 75% cap)."""
    cap = _vmem_capacity_bytes()
    ws = (2 * c * tk * x_itemsize      # double-buffered feature tile
          + 2 * tk * 4                 # double-buffered mask tile
          + 2 * cc_blocks * c * c * 4  # resident (C,C) output / target blocks
          + (1 << 20))                 # small outputs / partials
    return int(min(max(ws + (8 << 20), 32 << 20), int(cap * 0.75)))


# --------------------------------------------------------------------------
# Kernel 1: masked Gram matrix (normalization pre-folded into the mask).
#   grid = (B, nK)              or  (S, B, nK) for split-K
#   x_ref : (1, C, TK)  VMEM    feature-map tile (f32 or bf16)
#   m_ref : (1, TK)     VMEM    spatial mask * sqrt(1/sum(expanded mask))
#   g_ref : (1[,1], C, C) f32   VMEM-resident output block (accumulator)
# --------------------------------------------------------------------------
def _make_gram_kernel(k_axis, mxu_dtype):
    def kernel(x_ref, m_ref, g_ref):
        k = pl.program_id(k_axis)

        @pl.when(k == 0)
        def _init():
            g_ref[...] = jnp.zeros_like(g_ref)

        # f32 mask multiply (v5e VPU has no bf16 ALU), bf16 MXU operands,
        # f32 accumulation on the MXU into the resident output block.
        fm = (x_ref[0].astype(jnp.float32) * m_ref[...]).astype(mxu_dtype)
        g_ref[...] += lax.dot_general(
            fm, fm,
            dimension_numbers=(((1,), (1,)), ((), ())),   # contract HW, no .T
            preferred_element_type=jnp.float32)

    return kernel


def masked_gram(fm_nchw, spatial_mask, *, block_k=None, split_k=1,
                use_bf16_mxu=True):
    """gram(fm * mask) / sum(mask expanded to fm.shape); mask is spatial-only."""
    B, C, H, W = fm_nchw.shape
    HW = H * W
    assert spatial_mask.size == HW, "layer mask must be spatial-only (1,1,H,W)"

    x = fm_nchw.reshape(B, C, HW)
    if x.dtype not in (jnp.float32, jnp.bfloat16):
        x = x.astype(jnp.float32)
    m = spatial_mask.reshape(1, HW).astype(jnp.float32)

    # sum over the (B,C,H,W)-expanded mask == B*C*sum(spatial mask); guard 0.
    msum = jnp.maximum(jnp.sum(m), jnp.float32(1e-12))
    inv_msum = 1.0 / (msum * (B * C))
    m = m * jnp.sqrt(inv_msum)        # fold normalization into the mask

    itemsize = jnp.dtype(x.dtype).itemsize
    hwp, tk = _choose_tiling(HW, C, itemsize, cc_blocks=1, block_k=block_k)
    split_k = max(int(split_k), 1)
    if split_k > 1:
        hwp = _round_up(hwp, tk * split_k)
    if hwp != HW:
        x = jnp.pad(x, ((0, 0), (0, 0), (0, hwp - HW)))
        m = jnp.pad(m, ((0, 0), (0, hwp - HW)))
    n_k = hwp // tk

    mxu_dtype = jnp.bfloat16 if use_bf16_mxu else jnp.float32
    vmem_limit = _vmem_limit_bytes(C, tk, itemsize, cc_blocks=1)
    cost = pl.CostEstimate(
        flops=2 * B * C * C * hwp, transcendentals=0,
        bytes_accessed=int(x.size) * itemsize + int(m.size) * 4 + B * C * C * 4)

    if split_k == 1:
        return pl.pallas_call(
            _make_gram_kernel(k_axis=1, mxu_dtype=mxu_dtype),
            out_shape=jax.ShapeDtypeStruct((B, C, C), jnp.float32),
            grid=(B, n_k),
            in_specs=[
                pl.BlockSpec((1, C, tk), lambda b, k: (b, 0, k)),
                pl.BlockSpec((1, tk), lambda b, k: (0, k)),
            ],
            out_specs=pl.BlockSpec((1, C, C), lambda b, k: (b, 0, 0)),
            compiler_params=pltpu.CompilerParams(
                dimension_semantics=("parallel", "arbitrary"),
                vmem_limit_bytes=vmem_limit),
            cost_estimate=cost,
        )(x, m)

    # split-K: leading "parallel" axis keeps both v7x TensorCores busy at B==1;
    # each HW chunk is still read exactly once.
    nks = n_k // split_k
    partial = pl.pallas_call(
        _make_gram_kernel(k_axis=2, mxu_dtype=mxu_dtype),
        out_shape=jax.ShapeDtypeStruct((split_k, B, C, C), jnp.float32),
        grid=(split_k, B, nks),
        in_specs=[
            pl.BlockSpec((1, C, tk), lambda s, b, k: (b, 0, s * nks + k)),
            pl.BlockSpec((1, tk), lambda s, b, k: (0, s * nks + k)),
        ],
        out_specs=pl.BlockSpec((1, 1, C, C), lambda s, b, k: (s, b, 0, 0)),
        compiler_params=pltpu.CompilerParams(
            dimension_semantics=("parallel", "parallel", "arbitrary"),
            vmem_limit_bytes=vmem_limit),
        cost_estimate=cost,
    )(x, m)
    return jnp.sum(partial, axis=0)


# --------------------------------------------------------------------------
# Kernel 2: masked Gram + fused weighted-MSE against the target gram.
# Same tiling; finalize emits a per-batch partial of weight*mean((G-T)^2).
# --------------------------------------------------------------------------
def _make_gram_loss_kernel(mxu_dtype):
    def kernel(x_ref, m_ref, t_ref, s_ref, g_ref, part_ref):
        k = pl.program_id(1)

        @pl.when(k == 0)
        def _init():
            g_ref[...] = jnp.zeros_like(g_ref)

        fm = (x_ref[0].astype(jnp.float32) * m_ref[...]).astype(mxu_dtype)
        g_ref[...] += lax.dot_general(
            fm, fm,
            dimension_numbers=(((1,), (1,)), ((), ())),
            preferred_element_type=jnp.float32)

        @pl.when(k == pl.num_programs(1) - 1)
        def _finalize():
            d = g_ref[0] - t_ref[0]
            # s_ref[0,0] == weight / (B*C*C): per-batch MSE partial
            part_ref[...] = jnp.reshape(jnp.sum(d * d) * s_ref[0, 0], (1, 1, 1))

    return kernel


def masked_gram_loss(fm_nchw, spatial_mask, target_gram, weight, *,
                     block_k=None, use_bf16_mxu=True):
    """Returns (img_gram, weight * MSE(img_gram, target_gram)) in one kernel."""
    B, C, H, W = fm_nchw.shape
    HW = H * W
    assert spatial_mask.size == HW, "layer mask must be spatial-only (1,1,H,W)"

    x = fm_nchw.reshape(B, C, HW)
    if x.dtype not in (jnp.float32, jnp.bfloat16):
        x = x.astype(jnp.float32)
    m = spatial_mask.reshape(1, HW).astype(jnp.float32)

    msum = jnp.maximum(jnp.sum(m), jnp.float32(1e-12))
    inv_msum = 1.0 / (msum * (B * C))
    m = m * jnp.sqrt(inv_msum)
    mse_scale = jnp.full((1, 1), jnp.float32(weight) / (B * C * C), jnp.float32)

    itemsize = jnp.dtype(x.dtype).itemsize
    hwp, tk = _choose_tiling(HW, C, itemsize, cc_blocks=2, block_k=block_k)
    if hwp != HW:
        x = jnp.pad(x, ((0, 0), (0, 0), (0, hwp - HW)))
        m = jnp.pad(m, ((0, 0), (0, hwp - HW)))
    n_k = hwp // tk

    mxu_dtype = jnp.bfloat16 if use_bf16_mxu else jnp.float32
    cost = pl.CostEstimate(
        flops=2 * B * C * C * hwp, transcendentals=0,
        bytes_accessed=int(x.size) * itemsize + int(m.size) * 4
        + 2 * B * C * C * 4)

    img_gram, part = pl.pallas_call(
        _make_gram_loss_kernel(mxu_dtype),
        out_shape=(
            jax.ShapeDtypeStruct((B, C, C), jnp.float32),
            jax.ShapeDtypeStruct((B, 1, 1), jnp.float32),
        ),
        grid=(B, n_k),
        in_specs=[
            pl.BlockSpec((1, C, tk), lambda b, k: (b, 0, k)),
            pl.BlockSpec((1, tk), lambda b, k: (0, k)),
            pl.BlockSpec((1, C, C), lambda b, k: (b, 0, 0)),
            pl.BlockSpec(memory_space=pltpu.MemorySpace.SMEM),
        ],
        out_specs=(
            pl.BlockSpec((1, C, C), lambda b, k: (b, 0, 0)),
            pl.BlockSpec((1, 1, 1), lambda b, k: (b, 0, 0)),
        ),
        compiler_params=pltpu.CompilerParams(
            dimension_semantics=("parallel", "arbitrary"),
            vmem_limit_bytes=_vmem_limit_bytes(C, tk, itemsize, cc_blocks=2)),
        cost_estimate=cost,
    )(x, m, target_gram.astype(jnp.float32), mse_scale)

    return img_gram, jnp.sum(part)   # tiny (B,) reduction of per-batch partials


# --------------------------------------------------------------------------
# JAX-side module mirroring StyleLossPass2's forward() state machine.
# --------------------------------------------------------------------------
class StyleLossPass2:
    def __init__(self, style_weight, layer_mask, match_patch_size,
                 stride=1, block_k=None, split_k=1, use_bf16_mxu=True):
        self.weight = float(style_weight)
        self.mask = layer_mask                   # spatial mask (1, 1, H, W)
        self.patch_size = match_patch_size
        self.stride = stride
        self.block_k = block_k
        self.split_k = split_k                   # >1: split-K for v7x @ B==1
        self.use_bf16_mxu = use_bf16_mxu
        self.mode = "None"
        self.ref_corr = None
        self.content_fm = None
        self.target_gram = None
        self.img_gram = None
        self.loss = None

    def set_ref_infor(self, ref_corr):
        self.ref_corr = ref_corr

    def get_ref_infor(self):
        return self.ref_corr

    def forward(self, x):
        if self.mode == "capture_content":
            self.content_fm = x
            # torch expands the mask to x.shape here; we keep the spatial mask
            # un-materialized and fold the expansion into the normalization
            # factor B*C*sum(spatial mask) inside the kernel wrappers.
        elif self.mode == "capture_style_ref":
            # TODO(synk): match_fm_ref (Python-loop nearest-neighbour patch
            # matching with per-location argmax over candidate sets) has no
            # clean Pallas equivalent; the un-permuted style feature map is
            # used as the matched feature map here.
            self.target_gram = masked_gram(
                x, self.mask, block_k=self.block_k, split_k=self.split_k,
                use_bf16_mxu=self.use_bf16_mxu)
        elif self.mode == "capture_style_others":
            if self.ref_corr is None:
                return x
            # TODO(synk): upsample_corr (data-dependent per-pixel gather from
            # the ref-layer correspondence map) is not translated.
            self.target_gram = masked_gram(
                x, self.mask, block_k=self.block_k, split_k=self.split_k,
                use_bf16_mxu=self.use_bf16_mxu)
        elif self.mode == "loss":
            # TODO(synk): the backward gradient-mask hook of the torch module
            # is autograd-only and not part of the forward pass.
            self.img_gram, self.loss = masked_gram_loss(
                x, self.mask, self.target_gram, self.weight,
                block_k=self.block_k, use_bf16_mxu=self.use_bf16_mxu)
        return x


if __name__ == "__main__":
    key = jax.random.PRNGKey(0)
    k1, k2, k3, k4 = jax.random.split(key, 4)

    B, C, H, W = 2, 8, 16, 16                    # small demo shapes (HW = 256)
    content_fm = jax.random.normal(k1, (B, C, H, W), jnp.float32)
    style_fm = jax.random.normal(k2, (B, C, H, W), jnp.float32)
    img_fm = jax.random.normal(k3, (B, C, H, W), jnp.float32)
    mask = (jax.random.uniform(k4, (1, 1, H, W)) > 0.5).astype(jnp.float32)

    # block_k=128 so the demo exercises the multi-step HW reduction (nK = 2).
    module = StyleLossPass2(style_weight=5.0, layer_mask=mask,
                            match_patch_size=3, block_k=128)

    module.mode = "capture_content"
    module.forward(content_fm)

    module.mode = "capture_style_ref"
    module.forward(style_fm)

    module.mode = "loss"
    out = module.forward(img_fm)

    jax.block_until_ready(out)
    target_gram = jax.block_until_ready(module.target_gram)
    img_gram = jax.block_until_ready(module.img_gram)
    loss_val = jax.block_until_ready(module.loss)

    # pure-JAX f32 reference for a correctness sanity check
    def ref_gram(fm, m):
        mb = jnp.broadcast_to(m, fm.shape)
        xf = (fm * mb).reshape(fm.shape[0], fm.shape[1], -1)
        g = jnp.einsum("bcn,bdn->bcd", xf, xf)
        return g / jnp.sum(mb)

    tgt_ref = ref_gram(style_fm, mask)
    img_ref = ref_gram(img_fm, mask)
    loss_ref = jnp.mean((img_ref - tgt_ref) ** 2) * 5.0

    assert bool(jnp.allclose(target_gram, tgt_ref, rtol=3e-2, atol=3e-4))
    assert bool(jnp.allclose(img_gram, img_ref, rtol=3e-2, atol=3e-4))
    assert bool(jnp.allclose(loss_val, loss_ref, rtol=5e-2, atol=1e-6))
    assert bool(jnp.isfinite(loss_val))

    # split-K path (keeps both v7x TensorCores busy at B==1): same numerics.
    g_split = jax.block_until_ready(
        masked_gram(style_fm, mask, block_k=128, split_k=2))
    assert bool(jnp.allclose(g_split, tgt_ref, rtol=3e-2, atol=3e-4))

    # bf16 activation path (halved HBM traffic on v6e/v7x): loose abs check.
    g_bf16 = jax.block_until_ready(
        masked_gram(img_fm.astype(jnp.bfloat16), mask, block_k=128))
    max_ref = float(jnp.max(jnp.abs(img_ref)))
    assert float(jnp.max(jnp.abs(g_bf16 - img_ref))) <= 0.05 * max_ref + 1e-6

    # non-128-multiple spatial size exercises the zero-padding path.
    img_odd = jax.random.normal(k3, (1, C, 10, 15), jnp.float32)
    mask_odd = (jax.random.uniform(k4, (1, 1, 10, 15)) > 0.5).astype(jnp.float32)
    g_odd = jax.block_until_ready(masked_gram(img_odd, mask_odd))
    g_odd_ref = ref_gram(img_odd, mask_odd)
    assert bool(jnp.allclose(g_odd, g_odd_ref, rtol=3e-2, atol=3e-4))

    print("KERNEL_OK")
</pallas_src>

<mosaic_0001>
module attributes {stable_mosaic.version = 11 : i64} {
  func.func @kernel(%arg0: i32, %arg1: i32, %arg2: memref<1x8x128xf32, #tpu.memory_space<vmem>>, %arg3: memref<1x128xf32, #tpu.memory_space<vmem>>, %arg4: memref<1x8x8xf32, #tpu.memory_space<vmem>>) attributes {dimension_semantics = [#tpu.dimension_semantics<parallel>, #tpu.dimension_semantics<arbitrary>], iteration_bounds = array<i64: 2, 2>, scalar_prefetch = 0 : i64, scratch_operands = 0 : i64, tpu.core_type = #tpu.core_type<tc>, window_params = [{transform_indices = @transform_0, window_bounds = array<i64: 1, 8, 128>}, {transform_indices = @transform_1, window_bounds = array<i64: 1, 128>}, {transform_indices = @transform_2, window_bounds = array<i64: 1, 8, 8>}]} {
    %c0_i32 = arith.constant 0 : i32
    %0 = arith.cmpi eq, %arg1, %c0_i32 : i32
    %1 = arith.extui %0 : i1 to i32
    %c0_i32_0 = arith.constant 0 : i32
    %2 = arith.cmpi ne, %1, %c0_i32_0 : i32
    scf.if %2 {
      %cst_11 = arith.constant 0.000000e+00 : f32
      %14 = vector.broadcast %cst_11 : f32 to vector<1x8x8xf32>
      %c0_12 = arith.constant 0 : index
      %c0_13 = arith.constant 0 : index
      %c0_14 = arith.constant 0 : index
      %15 = vector.load %arg4[%c0_12, %c0_13, %c0_14] : memref<1x8x8xf32, #tpu.memory_space<vmem>>, vector<1x8x8xf32>
      tpu.vector_store %arg4[%c0_12, %c0_13, %c0_14], %14 {strides = array<i32>} : memref<1x8x8xf32, #tpu.memory_space<vmem>>, vector<1x8x8xf32>,
    } else {
    }
    %c0 = arith.constant 0 : index
    %c0_1 = arith.constant 0 : index
    %c0_2 = arith.constant 0 : index
    %3 = vector.load %arg2[%c0, %c0_1, %c0_2] : memref<1x8x128xf32, #tpu.memory_space<vmem>>, vector<1x8x128xf32>
    %4 = vector.shape_cast %3 : vector<1x8x128xf32> to vector<8x128xf32>
    %c0_3 = arith.constant 0 : index
    %c0_4 = arith.constant 0 : index
    %5 = vector.load %arg3[%c0_3, %c0_4] : memref<1x128xf32, #tpu.memory_space<vmem>>, vector<1x128xf32>
    %6 = vector.broadcast %5 : vector<1x128xf32> to vector<8x128xf32>
    %7 = arith.mulf %4, %6 : vector<8x128xf32>
    %8 = arith.truncf %7 : vector<8x128xf32> to vector<8x128xbf16>
    %c0_5 = arith.constant 0 : index
    %c0_6 = arith.constant 0 : index
    %c0_7 = arith.constant 0 : index
    %9 = vector.load %arg4[%c0_5, %c0_6, %c0_7] : memref<1x8x8xf32, #tpu.memory_space<vmem>>, vector<1x8x8xf32>
    %cst = arith.constant dense<0.000000e+00> : vector<8x8xf32>
    %10 = tpu.matmul %8, %8, %cst {dimension_numbers = #tpu.dot_dimension_numbers<[1], [1], [0], [0], [0, 0, 1, 0], [], []>} : vector<8x128xbf16>, vector<8x128xbf16>, vector<8x8xf32> -> vector<8x8xf32>
    %11 = vector.shape_cast %10 : vector<8x8xf32> to vector<1x8x8xf32>
    %12 = arith.addf %9, %11 : vector<1x8x8xf32>
    %c0_8 = arith.constant 0 : index
    %c0_9 = arith.constant 0 : index
    %c0_10 = arith.constant 0 : index
    %13 = vector.load %arg4[%c0_8, %c0_9, %c0_10] : memref<1x8x8xf32, #tpu.memory_space<vmem>>, vector<1x8x8xf32>
    tpu.vector_store %arg4[%c0_8, %c0_9, %c0_10], %12 {strides = array<i32>} : memref<1x8x8xf32, #tpu.memory_space<vmem>>, vector<1x8x8xf32>,
    return
  }
  func.func @transform_0(%arg0: i32, %arg1: i32) -> (i32, i32, i32) {
    %c0_i32 = arith.constant 0 : i32
    %c0_i32_0 = arith.constant 0 : i32
    return %arg0, %c0_i32, %arg1 : i32, i32, i32
  }
  func.func @transform_1(%arg0: i32, %arg1: i32) -> (i32, i32) {
    %c0_i32 = arith.constant 0 : i32
    %c0_i32_0 = arith.constant 0 : i32
    return %c0_i32, %arg1 : i32, i32
  }
  func.func @transform_2(%arg0: i32, %arg1: i32) -> (i32, i32, i32) {
    %c0_i32 = arith.constant 0 : i32
    %c0_i32_0 = arith.constant 0 : i32
    %c0_i32_1 = arith.constant 0 : i32
    return %arg0, %c0_i32, %c0_i32_0 : i32, i32, i32
  }
}

</mosaic_0001>

<bundles_post_ra>
// kernel: tpu_custom_call.1
= control target key start
LH: loop header
LB: loop body
LE: loop exit
PB: predicated region body
PF: predicated region fallthrough
CT: control target
= control target key end

     0   :  { %7 = vsyncpa [#allocation3], 0  ;;  %s984_s0 = inlined_call_operand.hbm [shape: f32[2,8,256], index: 0, kind: input, shape index: {}]   ;;  %s985_s1 = inlined_call_operand.hbm [shape: f32[1,256], index: 1, kind: input, shape index: {}]   ;;  %s986_s2 = inlined_call_operand.hbm [shape: f32[2,8,8], index: 2, kind: output, shape index: {}]  }
   0x1   :  { %9 = vsyncpa [#allocation3 + $0x1], 0 }
   0x2   :  { %10 = vsyncpa [#allocation6], 0 }
   0x3   :  { %12 = vsyncpa [#allocation6 + $0x1], 0 }
   0x4   :  { %13 = vsyncpa [#allocation4], 0 }
   0x5   :  { %15 = vsyncpa [#allocation4 + $0x1], 0  ;;  %s737_s9 = smov 0   ;;  %s739_s10 = smov 0  }
   0x6   :  { %s741_s11 = smov 0   ;;  %s743_s12 = smov 0  }
   0x7   :  { %s745_s13 = smov 0   ;;  %s747_s14 = smov 0  }
   0x8   :  { %s749_s15 = smov 0   ;;  %s751_s16 = smov 0  }
   0x9   :  { %s753_s17 = smov 0   ;;  %s755_s18 = smov 0  }
   0xa   :  { %s757_s19 = smov 0   ;;  %s759_s20 = smov 0  }
   0xb   :  { %s761_s21 = smov 0   ;;  %s763_s22 = smov 0  }
   0xc LB: > { %992 = sst [smem:[#allocation11_spill]] %s699_s17  ;;  %s361_s23 = sadd.s32 4294967295, %s719_s22   ;;  %s719_s22 = sphi %s763_s22, %s21_s22   ;;  %s715_s21 = sphi %s761_s21, %s1012_s21   ;;  %s711_s20 = sphi %s759_s20, %s1022_s20   ;;  %s707_s19 = sphi %s757_s19, %s1010_s19   ;;  %s703_s18 = sphi %s755_s18, %s1021_s18   ;;  %s699_s17 = sphi %s753_s17, %s1009_s17   ;;  %s695_s16 = sphi %s751_s16, %s1020_s16   ;;  %s691_s15 = sphi %s749_s15, %s1019_s15   ;;  %s687_s14 = sphi %s747_s14, %s1018_s14   ;;  %s683_s13 = sphi %s745_s13, %s1017_s13   ;;  %s679_s12 = sphi %s743_s12, %s1016_s12   ;;  %s675_s11 = sphi %s741_s11, %s1015_s11   ;;  %s671_s10 = sphi %s739_s10, %s1014_s10   ;;  %s667_s9 = sphi %s737_s9, %s1013_s9  }
   0xd   : > { %993 = sst [smem:[#allocation12_spill]] %s715_s21  ;;  %s362_s24 = sadd.s32 4294967294, %s719_s22  }
   0xe   : > { %s30_s25 = sadd.s32 1, %s711_s20  ;;  %s33_s26 = sadd.s32 1, %s715_s21 }
   0xf   : > { %p31_p0 = scmp.ge.s32.totalorder %s30_s25, 2  ;;  %s42_s27 = sadd.s32 1, %s699_s17 }
  0x10   : > { %p49_p1 = scmp.ne.s32.totalorder %s699_s17, %s695_s16  ;;  %p50_p2 = scmp.eq.s32.totalorder %s719_s22, 0 }
  0x11   : > { %s1024_s25 = smov (%p31_p0, %s30_s25), 0  ;;  %s1026_s26 = smov (!%p31_p0, %s33_s26), %s715_s21 }
  0x12   : > { %994 = sst [smem:[#allocation13_spill]] %s1024_s25  ;;  %s818_s28 = ssub.s32 %s711_s20, %s1024_s25 }
  0x13   : > { %p822_p3 = por %p50_p2, %p49_p1  ;;  %p35_p4 = scmp.ge.s32.totalorder %s1026_s26, 2 }
  0x14   : > { %p55_p5 = scmp.ne.s32.totalorder %s695_s16, %s691_s15  ;;  %p827_p6 = scmp.eq.s32.totalorder %s361_s23, 0 }
  0x15   : > { %p66_p7 = scmp.eq.s32.totalorder %s818_s28, 0  ;;  %s1028_s26 = smov (%p35_p4, %s1026_s26), 0 }
  0x16   : > { %997 = sst [smem:[#allocation14_spill]] %s1028_s26  ;;  %p836_p8 = por %p827_p6, %p55_p5 }
  0x17   : > { %s94_s4 = sadd.s32 1, %s675_s11  ;;  %s37_s5 = ssub.s32 %s715_s21, %s1028_s26 }
  0x18   : > { %p104_p9 = scmp.ne.s32.totalorder %s675_s11, %s671_s10  ;;  %s39_s6 = sor.u32 %s818_s28, %s37_s5 }
  0x19   : > { %p92_p10 = scmp.eq.s32.totalorder %s37_s5, 0  ;;  %p40_p11 = scmp.eq.s32.totalorder %s39_s6, 0 }
  0x1a   : > { %p105_p12 = scmp.eq.s32.totalorder %s361_s23, 3  ;;  %p110_p0 = scmp.ne.s32.totalorder %s671_s10, %s667_s9 }
  0x1b   : > { %s847_s7 = scalar_select %p92_p10, %s675_s11, %s94_s4  }
  0x1c   : > { %s850_s8 = scalar_select %p40_p11, %s699_s17, %s42_s27  }
  0x1d   : > { %999 = sst [smem:[#allocation15_spill]] %s847_s7  ;;  %p852_p13 = por %p105_p12, %p104_p9 }
  0x1e   : > { %1000 = sst [smem:[#allocation16_spill]] %s850_s8  ;;  %p111_p1 = scmp.eq.s32.totalorder %s362_s24, 3 }
  0x1f   : > { %p991_p4 = scmp.lt.s32.totalorder %s719_s22, 4  ;;  %s131_s26 = sand.u32 1, %s699_s17  }
  0x20   : > { %p860_p5 = por %p111_p1, %p110_p0  ;;  %s365_s23 = sshll.u32 %s131_s26, 3 }
  0x21   : > { %s366_s27 = sshll.u32 %s715_s21, 1  ;;  %s135_s25 = scalar_lea.vmem [#allocation2], %s365_s23 }
  0x22   : > { %s139_s4 = sadd.s32 %s711_s20, %s366_s27  ;;  %s145_s24 = sshll.u32 %s135_s25, 4  ;;  %s146_s24 = int_to_ptr.vmem [resolvable:$true] %s145_s24 }
  0x23   : > { %s367_s6 = sshll.u32 %s139_s4, 3  ;;  %p383_p9 = pnand %p991_p4, %p822_p3 }
  0x24   : > { %s141_s7 = scalar_lea.hbm %s984_s0, %s367_s6  ;;  %p368_p10 = scmp.ge.s32.totalorder %s719_s22, 1 }
  0x25   : > { %s143_s21 = sshll.u32 %s141_s7, 4  ;;  %p167_p11 = scmp.lt.s32.totalorder %s719_s22, 5  ;;  %s144_s21 = int_to_ptr.hbm [resolvable:$true] %s143_s21 }
  0x26   : > { %s132_s27 = scalar_lea.sflag [#allocation3], %s131_s26  ;;  %s68_s17 = sadd.s32 1, %s687_s14 }
  0x27   : > { %385 = dma.hbm_to_vmem [thread:$0]  (!%p383_p9), %s144_s21, 128, %s146_s24, %s132_s27  }
  0x28   : > { %p875_p12 = pnand %p368_p10, %p167_p11  ;;  %p75_p0 = scmp.ne.s32.totalorder %s687_s14, %s683_s13 }
  0x29   : > { %s883_s8 = scalar_select %p66_p7, %s687_s14, %s68_s17  }
  0x2a   : > { %p81_p1 = scmp.ne.s32.totalorder %s683_s13, %s679_s12  ;;  %s152_s7 = sand.u32 1, %s687_s14  }
  0x2b   : > { %s158_s4 = scalar_lea.hbm %s985_s1, %s711_s20  ;;  %p77_p3 = por %p75_p0, %p50_p2 }
  0x2c   : > { %p898_p4 = por %p81_p1, %p827_p6  ;;  %s160_s26 = sshll.u32 %s158_s4, 4  ;;  %s161_s26 = int_to_ptr.hbm [resolvable:$true] %s160_s26 }
  0x2d   : > { %s155_s6 = scalar_lea.vmem [#allocation5], %s152_s7  ;;  %p1005_p7 = scmp.lt.s32.totalorder %s719_s22, 4 }
  0x2e   : > { %s162_s24 = sshll.u32 %s155_s6, 4  ;;  %s153_s12 = scalar_lea.sflag [#allocation6], %s152_s7  ;;  %s163_s24 = int_to_ptr.vmem [resolvable:$true] %s162_s24 }
  0x2f   : > { %p386_p9 = pnand %p1005_p7, %p77_p3  ;;  %171 = sbr.rel (%p875_p12) target bundleno = 212 (0xd4), region = 28 }
  0x30   : > { %s173_s28 = sand.u32 (!%p875_p12), 1, %s695_s16  }
  0x31   : > { %388 = dma.hbm_to_vmem [thread:$0]  (!%p386_p9), %s161_s26, 16, %s163_s24, %s153_s12  }
  0x32   : > { %s369_s30 = sshll.u32 (!%p875_p12), %s173_s28, 3  ;;  %s174_s27 = scalar_lea.sflag (!%p875_p12), [#allocation3], %s173_s28 }
  0x33   : > { %s177_s17 = scalar_lea.vmem (!%p875_p12), [#allocation2], %s369_s30 }
  0x34   : > { %654 = dma.done.wait (%p836_p8), %s174_s27, 128  }
  0x35   : > { %656 = vsyncadd (%p836_p8), %s174_s27, 4294967168  ;;  %s183_s29 = sand.u32 1, %s683_s13  }
  0x36   : > { %s184_s23 = scalar_lea.sflag [#allocation6], %s183_s29  ;;  %s186_s7 = scalar_lea.vmem [#allocation5], %s183_s29 }
  0x37   : > { %658 = dma.done.wait (%p898_p4), %s184_s23, 16  }
  0x38   : > { %660 = vsyncadd (%p898_p4), %s184_s23, 4294967280  ;;  %s209_s25 = sand.u32 1, %s671_s10   ;;  %p371_p2 = scmp.ne.s32.totalorder %s703_s18, 0 }
  0x39   : > { %s370_s4 = sshll.u32 %s209_s25, 3 }
  0x3a   : > { %s211_s26 = scalar_lea.vmem [#allocation7], %s370_s4  ;;  %216 = sbr.rel (%p371_p2) target bundleno = 65 (0x41), region = 40 }
  0x3f   : > { %vm217_vm0 = vcmask 64512   ;;  %v721_v0 = vmov 0.0  }
  0x40   : > { %218 = vst.msk [vmem:[%s211_s26] sm:$0xff] %vm217_vm0, %v721_v0 }
  0x41 PF: > { %v219_v1 = vld [vmem:[%s177_s17] sm:$0xff]  ;;  %s373_s3 = sshll.u32 %s707_s19, 3  ;;  %s256_s18 = sshll.u32 %s211_s26, 4  ;;  %vm241_vm1 = vcmask 64512   ;;  %s257_s18 = int_to_ptr.vmem [resolvable:$true] %s256_s18 }
  0x42   : > { %v508_v2 = vld [vmem:[%s186_s7] ss:$0 sm:$0xff]  ;;  %s254_s24 = scalar_lea.hbm %s986_s2, %s373_s3  ;;  %s244_s28 = scalar_lea.sflag [#allocation4], %s209_s25 }
  0x43   : > { %v224_v3 = vmul.f32 %v508_v2, %v219_v1  ;;  %s258_s12 = sshll.u32 %s254_s24, 4  ;;  %s589_s29 = scalar_lea.hbm %s986_s2, 16  ;;  %s259_s12 = int_to_ptr.hbm [resolvable:$true] %s258_s12 }
  0x44   : > { %s583_s30 = sshra.s32 %s259_s12, 4  ;;  %s584_s30 = int_to_ptr.hbm [resolvable:$true] %s583_s30 }
  0x45   : > { %v225_v4 = vpack.c.bf16 %v224_v3, %v224_v3  ;;  %s585_s27 = scalar_lea.hbm %s584_s30, 8  ;;  %p590_p10 = scmp.lt.s32.totalorder %s584_s30, %s986_s2 }
  0x46   : > { %p586_p6 = scmp.ne.s32.totalorder %s584_s30, %s585_s27  ;;  %p591_p11 = scmp.lt.s32.totalorder %s589_s29, %s585_s27 }
  0x47   : > { %234 = vmatpush.bf16.xpose.msra.mxu0 %v225_v4  ;;  %v226_v5 = vld [vmem:[%s211_s26] sm:$0xff] }
  0x48   : > { %p587_p8 = pnand %p586_p6, %p852_p13  ;;  %p592_p12 = por %p591_p11, %p590_p10 }
  0x4a   : > { %p588_p4 = pneg %p587_p8 }
  0x4c   : > { %p593_p0 = pnand %p592_p12, %p588_p4 }
  0x4e   : > { %235 = vmatmul.bf16.vlgmr.msra.gmra.mxu0 %v225_v4 }
  0xcb   : > { %v236_v6 = vpop.f32.mrf.mxu0 }
  0xcc   : > { %v240_v7 = vadd.f32 %v236_v6, %v226_v5 }
  0xce   : > { %242 = vst.msk [vmem:[%s211_s26] sm:$0xff] %vm241_vm1, %v240_v7 }
  0xcf   : > { %596 = shalt.err (!%p593_p0)
}
  0xd0   : > { %380 = dma.vmem_to_hbm [thread:$0]  (%p852_p13), %s257_s18, 128, %s259_s12, %s244_s28  }
  0xd3   : > { %v238_v8 = vpop.f32.mrf.mxu0 }
  0xd4 PF: > { %p394_p1 = scmp.ge.s32.totalorder %s719_s22, 2  ;;  %s270_s25 = sand.u32 1, %s667_s9  }
  0xd5   : > { %s271_s4 = scalar_lea.sflag [#allocation4], %s270_s25 }
  0xd6   : > { %p390_p3 = pnand %p394_p1, %p860_p5 }
  0xd8   : > { %p391_p7 = pneg %p390_p3 }
  0xda   : > { %662 = dma.done.wait (%p391_p7), %s271_s4, 128  }
  0xdb   : > { %664 = vsyncadd (%p391_p7), %s271_s4, 4294967168  ;;  %s21_s22 = sadd.s32 1, %s719_s22   ;;  %s1007_s15 = sld [smem:[#allocation15_spill]] }
  0xdc   : > { %p937_p9 = scmp.ge.s32.totalorder %s21_s22, 6   ;;  %s1008_s3 = sld [smem:[#allocation11_spill]] }
  0xdd   : > { %s1009_s17 = sld [smem:[#allocation16_spill]]  ;;  %s1013_s9 = smov %s671_s10 }
  0xde   : > { %s1010_s19 = sld [smem:[#allocation12_spill]]  ;;  %s1014_s10 = smov %s675_s11 }
  0xdf   : > { %s1011_s5 = sld [smem:[#allocation13_spill]]  ;;  %s1016_s12 = smov %s683_s13 }
  0xe0   : > { %s1012_s21 = sld [smem:[#allocation14_spill]]  ;;  %s1017_s13 = smov %s687_s14 }
  0xe1   : > { %s1015_s11 = smov %s1007_s15  ;;  %s1018_s14 = smov %s883_s8 }
  0xe2   : > { %s1019_s15 = smov %s695_s16  ;;  %s1020_s16 = smov %s1008_s3 }
  0xe3   : > { %s1021_s18 = smov %s711_s20  ;;  %20 = sbr.rel (!%p937_p9) target bundleno = 12 (0xc), region = 90 }
  0xe5   : > { %s1022_s20 = smov %s1011_s5 }
  0xe8   :  { %277 = vsyncpa [#allocation3], 1 }
  0xe9   :  { %279 = vsyncpa [#allocation3 + $0x1], 1 }
  0xea   :  { %280 = vsyncpa [#allocation6], 1 }
  0xeb   :  { %282 = vsyncpa [#allocation6 + $0x1], 1 }
  0xec   :  { %283 = vsyncpa [#allocation4], 1 }
  0xed   :  { %285 = vsyncpa [#allocation4 + $0x1], 1 }

</bundles_post_ra>
